<compile_context>
chip_gen: v6e
topology: v6e:2x2x1
jax: 0.10.0
libtpu: 0.0.40
codegen_flags: <defaults>
</compile_context>

<pallas_src>
import functools

import jax
import jax.numpy as jnp
from jax.experimental import pallas as pl
from jax.experimental.pallas import tpu as pltpu


# ----------------------------------------------------------------------------
# Fused kernel: one (batch tile, time chunk) grid step.
#   xproj_ref : (S_chunk, TB, 4H)  precomputed x @ W_ih + (b_ih + b_hh), time-major
#   bias_ref  : (S_chunk, TB, 1)   additive attention-mask bias (0 valid / -1e9 pad)
#   whh_ref   : (H, 4H)            recurrent weight (transposed), f32 or bf16
#   wa_ref    : (1, H)             attention Linear(H,1).weight (f32, VPU path)
#   wl_ref    : (H, O_pad)         label weight, zero-padded to 128 lanes
#   bl_ref    : (1, O_pad)         label bias, zero-padded
#   out_ref   : (TB, O_pad)        logits (lane-dense), written on the last chunk
#   h_scr/c_scr : (TB, H)          LSTM state, persists across time chunks
#   m_scr/l_scr : (TB, 1)          online-softmax running max / denominator
#   acc_scr     : (TB, H)          online-softmax running weighted sum of h
# ----------------------------------------------------------------------------
def fused_lstm_attn_kernel(xproj_ref, bias_ref, whh_ref, wa_ref, wl_ref, bl_ref,
                           out_ref, h_scr, c_scr, m_scr, l_scr, acc_scr, *, unroll):
    t_chunk = pl.program_id(1)
    s_chunk = xproj_ref.shape[0]
    H = h_scr.shape[-1]

    @pl.when(t_chunk == 0)
    def _init():
        h_scr[...] = jnp.zeros_like(h_scr)
        c_scr[...] = jnp.zeros_like(c_scr)
        m_scr[...] = jnp.full_like(m_scr, -1e30)
        l_scr[...] = jnp.zeros_like(l_scr)
        acc_scr[...] = jnp.zeros_like(acc_scr)

    whh = whh_ref[...]          # hoisted out of the time loop
    wa = wa_ref[...]            # (1, H)

    def step(s, carry):
        h, c, m, l, acc = carry
        x_t = xproj_ref[s]                               # (TB, 4H)
        gates = x_t.astype(jnp.float32) + jnp.dot(
            h.astype(whh.dtype), whh, preferred_element_type=jnp.float32)
        # PyTorch gate order: i, f, g, o.  sigmoid(x) = 0.5*(tanh(x/2)+1): one EUP
        # op per gate, keeping the EUP-bound serial loop as short as possible.
        # (H=32 makes these 32-lane sub-slices; keep H a multiple of 128 in prod.)
        i_g = 0.5 * (jnp.tanh(0.5 * gates[:, 0:H]) + 1.0)
        f_g = 0.5 * (jnp.tanh(0.5 * gates[:, H:2 * H]) + 1.0)
        g_g = jnp.tanh(gates[:, 2 * H:3 * H])
        o_g = 0.5 * (jnp.tanh(0.5 * gates[:, 3 * H:4 * H]) + 1.0)
        c_new = f_g * c + i_g * g_g
        h_new = o_g * jnp.tanh(c_new)

        # Online-softmax attention update.  Off the h/c critical path: step s+1
        # depends only on h_new/c_new, so this overlaps with the next step's matmul.
        e = jnp.sum(h_new * wa, axis=-1, keepdims=True) + bias_ref[s]   # (TB, 1)
        m_new = jnp.maximum(m, e)
        corr = jnp.exp(m - m_new)
        p = jnp.exp(e - m_new)
        l_new = corr * l + p
        acc_new = corr * acc + p * h_new
        return h_new, c_new, m_new, l_new, acc_new

    carry0 = (h_scr[...], c_scr[...], m_scr[...], l_scr[...], acc_scr[...])
    h, c, m, l, acc = jax.lax.fori_loop(0, s_chunk, step, carry0, unroll=unroll)

    # Persist state across time chunks (only chunk-boundary VMEM traffic).
    h_scr[...] = h
    c_scr[...] = c
    m_scr[...] = m
    l_scr[...] = l
    acc_scr[...] = acc

    @pl.when(t_chunk == pl.num_programs(1) - 1)
    def _finalize():
        applied = acc / l                                 # exact divide, once per tile
        out_ref[...] = (jnp.dot(applied.astype(wl_ref.dtype), wl_ref[...],
                                preferred_element_type=jnp.float32)
                        + bl_ref[...])


# ----------------------------------------------------------------------------
# Wrapper: embedding gather, hoisted input projection, padding, pallas_call.
# ----------------------------------------------------------------------------
def lstm_classifier_forward(tokens, mask, params, *, batch_tile=128, seq_chunk=16,
                            unroll=8, use_bf16_mxu=False):
    B, S = tokens.shape
    H = params["w_hh_t"].shape[0]
    O = params["w_label_t"].shape[1]
    f32 = jnp.float32
    mxu_dtype = jnp.bfloat16 if use_bf16_mxu else f32

    # ---- tile sizing ----
    # bf16 arrays need sublane multiples of 16; f32 needs 8.  At real batch sizes use
    # batch_tile >= 128 (MXU row utilization) and >= 2 batch tiles for v7x's 2 TCs.
    sub = 16 if use_bf16_mxu else 8
    TB = max(sub, min(batch_tile, ((B + sub - 1) // sub) * sub))
    TB = ((TB + sub - 1) // sub) * sub
    B_pad = ((B + TB - 1) // TB) * TB
    S_chunk = max(1, min(seq_chunk, S))
    S_pad = ((S + S_chunk - 1) // S_chunk) * S_chunk
    O_pad = max(128, ((O + 127) // 128) * 128)            # lane-dense logits
    unroll_steps = int(max(1, min(unroll, S_chunk)))      # bounded unroll

    # Embedding lookup (XLA gather) + hoisted input projection: one big matmul
    # over all time steps, outside the serial recurrence.
    x = jnp.take(params["embedding"], tokens, axis=0)                  # (B, S, E)
    xproj = x @ params["w_ih_t"] + params["bias"]                      # (B, S, 4H)
    xproj = jnp.transpose(xproj, (1, 0, 2))                            # (S, B, 4H)
    xproj = jnp.pad(xproj, ((0, S_pad - S), (0, B_pad - B), (0, 0)))
    xproj = xproj.astype(mxu_dtype)   # bf16 halves the HBM->VMEM DMA on v6e/v7x

    # Additive attention-mask bias, time-major with a trailing singleton lane:
    # 0 where valid, -1e9 where padded.  Padded time steps / batch rows are also
    # masked, so they cannot affect the attention-weighted output.
    maskbias = (mask.astype(f32) - 1.0) * 1e9                          # (B, S)
    maskbias = jnp.transpose(maskbias)[:, :, None]                     # (S, B, 1)
    maskbias = jnp.pad(maskbias, ((0, S_pad - S), (0, B_pad - B), (0, 0)),
                       constant_values=-1e9)

    whh = params["w_hh_t"].astype(mxu_dtype)                           # (H, 4H)
    wa = params["w_attn"]                                              # (1, H), f32
    wl = jnp.pad(params["w_label_t"], ((0, 0), (0, O_pad - O))).astype(mxu_dtype)
    bl = jnp.pad(params["b_label"], ((0, 0), (0, O_pad - O)))          # (1, O_pad)

    grid = (B_pad // TB, S_pad // S_chunk)   # (parallel batch tiles, arbitrary time)
    kernel = functools.partial(fused_lstm_attn_kernel, unroll=unroll_steps)

    out = pl.pallas_call(
        kernel,
        out_shape=jax.ShapeDtypeStruct((B_pad, O_pad), jnp.float32),
        grid_spec=pltpu.PrefetchScalarGridSpec(
            num_scalar_prefetch=0,
            grid=grid,
            in_specs=[
                pl.BlockSpec((S_chunk, TB, 4 * H), lambda b, t: (t, b, 0)),  # xproj
                pl.BlockSpec((S_chunk, TB, 1), lambda b, t: (t, b, 0)),      # mask bias
                pl.BlockSpec((H, 4 * H), lambda b, t: (0, 0)),               # W_hh^T
                pl.BlockSpec((1, H), lambda b, t: (0, 0)),                   # w_attn
                pl.BlockSpec((H, O_pad), lambda b, t: (0, 0)),               # w_label
                pl.BlockSpec((1, O_pad), lambda b, t: (0, 0)),               # b_label
            ],
            out_specs=pl.BlockSpec((TB, O_pad), lambda b, t: (b, 0)),
            scratch_shapes=[
                pltpu.VMEM((TB, H), jnp.float32),   # h
                pltpu.VMEM((TB, H), jnp.float32),   # c
                pltpu.VMEM((TB, 1), jnp.float32),   # m  (running max)
                pltpu.VMEM((TB, 1), jnp.float32),   # l  (running denominator)
                pltpu.VMEM((TB, H), jnp.float32),   # acc (running weighted h sum)
            ],
        ),
        compiler_params=pltpu.CompilerParams(
            dimension_semantics=("parallel", "arbitrary"),
            # Re-derive tile sizes against 64 MiB physical VMEM per TC on v7x.
            vmem_limit_bytes=32 * 1024 * 1024,
        ),
    )(xproj, maskbias, whh, wa, wl, bl)

    return out[:B, :O]


# ----------------------------------------------------------------------------
# Pure-JAX reference for sanity checking (keeps the no-op attention bias).
# ----------------------------------------------------------------------------
def reference_forward(tokens, mask, params):
    x = jnp.take(params["embedding"], tokens, axis=0)      # (B, S, E)
    x = jnp.transpose(x, (1, 0, 2))                        # (S, B, E)
    S, B, _ = x.shape
    H = params["w_hh_t"].shape[0]

    def step(carry, x_t):
        h, c = carry
        gates = x_t @ params["w_ih_t"] + h @ params["w_hh_t"] + params["bias"]
        i = jax.nn.sigmoid(gates[:, 0:H])
        f = jax.nn.sigmoid(gates[:, H:2 * H])
        g = jnp.tanh(gates[:, 2 * H:3 * H])
        o = jax.nn.sigmoid(gates[:, 3 * H:4 * H])
        c = f * c + i * g
        h = o * jnp.tanh(c)
        return (h, c), h

    (_, _), hs = jax.lax.scan(step, (jnp.zeros((B, H)), jnp.zeros((B, H))), x)
    enc = jnp.transpose(hs, (1, 0, 2))                     # (B, S, H)

    energy = jnp.sum(enc * params["w_attn"][None, :, :], axis=-1) + params["b_attn"][0, 0]
    energy = jnp.where(mask.astype(jnp.float32) > 0.0, energy, -1e9)
    alpha = jax.nn.softmax(energy, axis=1)
    applied = jnp.sum(alpha[:, :, None] * enc, axis=1)
    return applied @ params["w_label_t"] + params["b_label"]


# ----------------------------------------------------------------------------
# Deterministic parameter init (shapes follow the PyTorch module).
# ----------------------------------------------------------------------------
def init_params(key, vocab_size, embedding_length, hidden_size, output_size):
    ks = jax.random.split(key, 9)
    H, E, V, O = hidden_size, embedding_length, vocab_size, output_size
    k_lstm = 1.0 / jnp.sqrt(jnp.float32(H))

    def uni(k, shape, bound):
        return jax.random.uniform(k, shape, jnp.float32, -bound, bound)

    embedding = jax.random.normal(ks[0], (V, E), jnp.float32)
    w_ih = uni(ks[1], (4 * H, E), k_lstm)          # PyTorch weight_ih_l0
    w_hh = uni(ks[2], (4 * H, H), k_lstm)          # PyTorch weight_hh_l0
    b_ih = uni(ks[3], (4 * H,), k_lstm)
    b_hh = uni(ks[4], (4 * H,), k_lstm)
    w_attn = uni(ks[5], (1, H), k_lstm)            # Linear(H, 1).weight
    b_attn = uni(ks[6], (1, 1), k_lstm)            # Linear(H, 1).bias (no-op under softmax)
    w_label = uni(ks[7], (O, H), k_lstm)           # Linear(H, O).weight
    b_label = uni(ks[8], (O,), k_lstm)             # Linear(H, O).bias

    return {
        "embedding": embedding,
        "w_ih_t": jnp.transpose(w_ih),             # (E, 4H)
        "w_hh_t": jnp.transpose(w_hh),             # (H, 4H)
        "bias": (b_ih + b_hh).reshape(1, 4 * H),   # (1, 4H)
        "w_attn": w_attn,                          # (1, H)
        "b_attn": b_attn,                          # (1, 1)
        "w_label_t": jnp.transpose(w_label),       # (H, O)
        "b_label": b_label.reshape(1, O),          # (1, O)
    }


if __name__ == "__main__":
    # Small, module-consistent shapes (batch kept >TB so the parallel batch axis and
    # the cross-chunk state carry are both exercised).
    batch_size = 12
    seq_len = 10
    hidden_size = 32
    embedding_length = 16
    vocab_size = 50
    output_size = 4

    key = jax.random.PRNGKey(0)
    k_param, k_tok, k_len = jax.random.split(key, 3)

    params = init_params(k_param, vocab_size, embedding_length,
                         hidden_size, output_size)

    tokens = jax.random.randint(k_tok, (batch_size, seq_len), 0, vocab_size,
                                dtype=jnp.int32)
    # Variable-length sequences: mask = 1 for valid positions, 0 for padding.
    lengths = jax.random.randint(k_len, (batch_size,), 3, seq_len + 1)
    mask = (jnp.arange(seq_len)[None, :] < lengths[:, None]).astype(jnp.float32)

    ref = jax.block_until_ready(reference_forward(tokens, mask, params))

    # f32 run: batch_tile=8 gives 2 "parallel" batch tiles and seq_chunk=4 gives 3
    # "arbitrary" time chunks at these toy shapes.  Use batch_tile>=128 / seq_chunk~16
    # at production sizes.
    logits = lstm_classifier_forward(tokens, mask, params,
                                     batch_tile=8, seq_chunk=4, unroll=4)
    logits = jax.block_until_ready(logits)
    assert logits.shape == (batch_size, output_size)
    assert jnp.allclose(logits, ref, rtol=1e-2, atol=1e-2), (logits, ref)

    # bf16-MXU run (production path on v6e/v7x); loose tolerance vs the f32 reference.
    logits_bf16 = jax.block_until_ready(
        lstm_classifier_forward(tokens, mask, params, batch_tile=8, seq_chunk=4,
                                unroll=4, use_bf16_mxu=True))
    assert jnp.allclose(logits_bf16, ref, rtol=1e-1, atol=1e-1), (logits_bf16, ref)

    print("KERNEL_OK")
</pallas_src>

<mosaic_0001>
module attributes {stable_mosaic.version = 11 : i64} {
  func.func @fused_lstm_attn_kernel(%arg0: i32, %arg1: i32, %arg2: memref<4x8x128xf32, #tpu.memory_space<vmem>>, %arg3: memref<4x8x1xf32, #tpu.memory_space<vmem>>, %arg4: memref<32x128xf32, #tpu.memory_space<vmem>>, %arg5: memref<1x32xf32, #tpu.memory_space<vmem>>, %arg6: memref<32x128xf32, #tpu.memory_space<vmem>>, %arg7: memref<1x128xf32, #tpu.memory_space<vmem>>, %arg8: memref<8x128xf32, #tpu.memory_space<vmem>>, %arg9: memref<8x32xf32, #tpu.memory_space<vmem>>, %arg10: memref<8x32xf32, #tpu.memory_space<vmem>>, %arg11: memref<8x1xf32, #tpu.memory_space<vmem>>, %arg12: memref<8x1xf32, #tpu.memory_space<vmem>>, %arg13: memref<8x32xf32, #tpu.memory_space<vmem>>) attributes {dimension_semantics = [#tpu.dimension_semantics<parallel>, #tpu.dimension_semantics<arbitrary>], iteration_bounds = array<i64: 2, 3>, scalar_prefetch = 0 : i64, scratch_operands = 5 : i64, tpu.core_type = #tpu.core_type<tc>, window_params = [{transform_indices = @transform_0, window_bounds = array<i64: 4, 8, 128>}, {transform_indices = @transform_1, window_bounds = array<i64: 4, 8, 1>}, {pipeline_mode = #tpu.pipeline_mode<synchronous>, transform_indices = @transform_2, window_bounds = array<i64: 32, 128>}, {pipeline_mode = #tpu.pipeline_mode<synchronous>, transform_indices = @transform_3, window_bounds = array<i64: 1, 32>}, {pipeline_mode = #tpu.pipeline_mode<synchronous>, transform_indices = @transform_4, window_bounds = array<i64: 32, 128>}, {pipeline_mode = #tpu.pipeline_mode<synchronous>, transform_indices = @transform_5, window_bounds = array<i64: 1, 128>}, {transform_indices = @transform_6, window_bounds = array<i64: 8, 128>}]} {
    %c0_i32 = arith.constant 0 : i32
    %0 = arith.cmpi eq, %arg1, %c0_i32 : i32
    %1 = arith.extui %0 : i1 to i32
    %c0_i32_0 = arith.constant 0 : i32
    %2 = arith.cmpi ne, %1, %c0_i32_0 : i32
    scf.if %2 {
      %cst_86 = arith.constant 0.000000e+00 : f32
      %242 = vector.broadcast %cst_86 : f32 to vector<8x32xf32>
      %c0_87 = arith.constant 0 : index
      %c0_88 = arith.constant 0 : index
      %243 = vector.load %arg9[%c0_87, %c0_88] : memref<8x32xf32, #tpu.memory_space<vmem>>, vector<8x32xf32>
      tpu.vector_store %arg9[%c0_87, %c0_88], %242 {strides = array<i32>} : memref<8x32xf32, #tpu.memory_space<vmem>>, vector<8x32xf32>,
      %cst_89 = arith.constant 0.000000e+00 : f32
      %244 = vector.broadcast %cst_89 : f32 to vector<8x32xf32>
      %c0_90 = arith.constant 0 : index
      %c0_91 = arith.constant 0 : index
      %245 = vector.load %arg10[%c0_90, %c0_91] : memref<8x32xf32, #tpu.memory_space<vmem>>, vector<8x32xf32>
      tpu.vector_store %arg10[%c0_90, %c0_91], %244 {strides = array<i32>} : memref<8x32xf32, #tpu.memory_space<vmem>>, vector<8x32xf32>,
      %cst_92 = arith.constant -1.000000e+30 : f32
      %246 = vector.broadcast %cst_92 : f32 to vector<8x1xf32>
      %c0_93 = arith.constant 0 : index
      %c0_94 = arith.constant 0 : index
      %247 = vector.load %arg11[%c0_93, %c0_94] : memref<8x1xf32, #tpu.memory_space<vmem>>, vector<8x1xf32>
      tpu.vector_store %arg11[%c0_93, %c0_94], %246 {strides = array<i32>} : memref<8x1xf32, #tpu.memory_space<vmem>>, vector<8x1xf32>,
      %cst_95 = arith.constant 0.000000e+00 : f32
      %248 = vector.broadcast %cst_95 : f32 to vector<8x1xf32>
      %c0_96 = arith.constant 0 : index
      %c0_97 = arith.constant 0 : index
      %249 = vector.load %arg12[%c0_96, %c0_97] : memref<8x1xf32, #tpu.memory_space<vmem>>, vector<8x1xf32>
      tpu.vector_store %arg12[%c0_96, %c0_97], %248 {strides = array<i32>} : memref<8x1xf32, #tpu.memory_space<vmem>>, vector<8x1xf32>,
      %cst_98 = arith.constant 0.000000e+00 : f32
      %250 = vector.broadcast %cst_98 : f32 to vector<8x32xf32>
      %c0_99 = arith.constant 0 : index
      %c0_100 = arith.constant 0 : index
      %251 = vector.load %arg13[%c0_99, %c0_100] : memref<8x32xf32, #tpu.memory_space<vmem>>, vector<8x32xf32>
      tpu.vector_store %arg13[%c0_99, %c0_100], %250 {strides = array<i32>} : memref<8x32xf32, #tpu.memory_space<vmem>>, vector<8x32xf32>,
    } else {
    }
    %c0 = arith.constant 0 : index
    %c0_1 = arith.constant 0 : index
    %3 = vector.load %arg4[%c0, %c0_1] : memref<32x128xf32, #tpu.memory_space<vmem>>, vector<32x128xf32>
    %c0_2 = arith.constant 0 : index
    %c0_3 = arith.constant 0 : index
    %4 = vector.load %arg5[%c0_2, %c0_3] : memref<1x32xf32, #tpu.memory_space<vmem>>, vector<1x32xf32>
    %c0_4 = arith.constant 0 : index
    %c0_5 = arith.constant 0 : index
    %5 = vector.load %arg9[%c0_4, %c0_5] : memref<8x32xf32, #tpu.memory_space<vmem>>, vector<8x32xf32>
    %c0_6 = arith.constant 0 : index
    %c0_7 = arith.constant 0 : index
    %6 = vector.load %arg10[%c0_6, %c0_7] : memref<8x32xf32, #tpu.memory_space<vmem>>, vector<8x32xf32>
    %c0_8 = arith.constant 0 : index
    %c0_9 = arith.constant 0 : index
    %7 = vector.load %arg11[%c0_8, %c0_9] : memref<8x1xf32, #tpu.memory_space<vmem>>, vector<8x1xf32>
    %c0_10 = arith.constant 0 : index
    %c0_11 = arith.constant 0 : index
    %8 = vector.load %arg12[%c0_10, %c0_11] : memref<8x1xf32, #tpu.memory_space<vmem>>, vector<8x1xf32>
    %c0_12 = arith.constant 0 : index
    %c0_13 = arith.constant 0 : index
    %9 = vector.load %arg13[%c0_12, %c0_13] : memref<8x32xf32, #tpu.memory_space<vmem>>, vector<8x32xf32>
    %c0_i32_14 = arith.constant 0 : i32
    %10 = arith.index_cast %c0_i32_14 : i32 to index
    %c0_15 = arith.constant 0 : index
    %c0_16 = arith.constant 0 : index
    %11 = vector.load %arg2[%10, %c0_15, %c0_16] : memref<4x8x128xf32, #tpu.memory_space<vmem>>, vector<1x8x128xf32>
    %12 = vector.shape_cast %11 : vector<1x8x128xf32> to vector<8x128xf32>
    %cst = arith.constant dense<0.000000e+00> : vector<8x128xf32>
    %13 = tpu.matmul %5, %3, %cst {dimension_numbers = #tpu.dot_dimension_numbers<[1], [0], [0], [1], [0, 0, 1, 1], [], []>} : vector<8x32xf32>, vector<32x128xf32>, vector<8x128xf32> -> vector<8x128xf32>
    %14 = arith.addf %12, %13 : vector<8x128xf32>
    %15 = vector.extract_strided_slice %14 {offsets = [0, 0], sizes = [8, 32], strides = [1, 1]} : vector<8x128xf32> to vector<8x32xf32>
    %cst_17 = arith.constant 5.000000e-01 : f32
    %16 = vector.broadcast %cst_17 : f32 to vector<8x32xf32>
    %17 = arith.mulf %16, %15 : vector<8x32xf32>
    %18 = math.tanh %17 : vector<8x32xf32>
    %cst_18 = arith.constant 1.000000e+00 : f32
    %19 = vector.broadcast %cst_18 : f32 to vector<8x32xf32>
    %20 = arith.addf %18, %19 : vector<8x32xf32>
    %cst_19 = arith.constant 5.000000e-01 : f32
    %21 = vector.broadcast %cst_19 : f32 to vector<8x32xf32>
    %22 = arith.mulf %21, %20 : vector<8x32xf32>
    %23 = vector.extract_strided_slice %14 {offsets = [0, 32], sizes = [8, 32], strides = [1, 1]} : vector<8x128xf32> to vector<8x32xf32>
    %cst_20 = arith.constant 5.000000e-01 : f32
    %24 = vector.broadcast %cst_20 : f32 to vector<8x32xf32>
    %25 = arith.mulf %24, %23 : vector<8x32xf32>
    %26 = math.tanh %25 : vector<8x32xf32>
    %cst_21 = arith.constant 1.000000e+00 : f32
    %27 = vector.broadcast %cst_21 : f32 to vector<8x32xf32>
    %28 = arith.addf %26, %27 : vector<8x32xf32>
    %cst_22 = arith.constant 5.000000e-01 : f32
    %29 = vector.broadcast %cst_22 : f32 to vector<8x32xf32>
    %30 = arith.mulf %29, %28 : vector<8x32xf32>
    %31 = vector.extract_strided_slice %14 {offsets = [0, 64], sizes = [8, 32], strides = [1, 1]} : vector<8x128xf32> to vector<8x32xf32>
    %32 = math.tanh %31 : vector<8x32xf32>
    %33 = vector.extract_strided_slice %14 {offsets = [0, 96], sizes = [8, 32], strides = [1, 1]} : vector<8x128xf32> to vector<8x32xf32>
    %cst_23 = arith.constant 5.000000e-01 : f32
    %34 = vector.broadcast %cst_23 : f32 to vector<8x32xf32>
    %35 = arith.mulf %34, %33 : vector<8x32xf32>
    %36 = math.tanh %35 : vector<8x32xf32>
    %cst_24 = arith.constant 1.000000e+00 : f32
    %37 = vector.broadcast %cst_24 : f32 to vector<8x32xf32>
    %38 = arith.addf %36, %37 : vector<8x32xf32>
    %cst_25 = arith.constant 5.000000e-01 : f32
    %39 = vector.broadcast %cst_25 : f32 to vector<8x32xf32>
    %40 = arith.mulf %39, %38 : vector<8x32xf32>
    %41 = arith.mulf %30, %6 : vector<8x32xf32>
    %42 = arith.mulf %22, %32 : vector<8x32xf32>
    %43 = arith.addf %41, %42 : vector<8x32xf32>
    %44 = math.tanh %43 : vector<8x32xf32>
    %45 = arith.mulf %40, %44 : vector<8x32xf32>
    %46 = vector.broadcast %4 : vector<1x32xf32> to vector<8x32xf32>
    %47 = arith.mulf %45, %46 : vector<8x32xf32>
    %cst_26 = arith.constant dense<0.000000e+00> : vector<8xf32>
    %48 = vector.multi_reduction <add>, %47, %cst_26 [1] : vector<8x32xf32> to vector<8xf32>
    %49 = vector.shape_cast %48 : vector<8xf32> to vector<8x1xf32>
    %50 = arith.index_cast %c0_i32_14 : i32 to index
    %c0_27 = arith.constant 0 : index
    %c0_28 = arith.constant 0 : index
    %51 = vector.load %arg3[%50, %c0_27, %c0_28] : memref<4x8x1xf32, #tpu.memory_space<vmem>>, vector<1x8x1xf32>
    %52 = vector.shape_cast %51 : vector<1x8x1xf32> to vector<8x1xf32>
    %53 = arith.addf %49, %52 : vector<8x1xf32>
    %54 = arith.maximumf %7, %53 : vector<8x1xf32>
    %55 = arith.subf %7, %54 : vector<8x1xf32>
    %56 = math.exp %55 : vector<8x1xf32>
    %57 = arith.subf %53, %54 : vector<8x1xf32>
    %58 = math.exp %57 : vector<8x1xf32>
    %59 = arith.mulf %56, %8 : vector<8x1xf32>
    %60 = arith.addf %59, %58 : vector<8x1xf32>
    %61 = vector.broadcast %56 : vector<8x1xf32> to vector<8x32xf32>
    %62 = arith.mulf %61, %9 : vector<8x32xf32>
    %63 = vector.broadcast %58 : vector<8x1xf32> to vector<8x32xf32>
    %64 = arith.mulf %63, %45 : vector<8x32xf32>
    %65 = arith.addf %62, %64 : vector<8x32xf32>
    %c1_i32 = arith.constant 1 : i32
    %66 = arith.index_cast %c1_i32 : i32 to index
    %c0_29 = arith.constant 0 : index
    %c0_30 = arith.constant 0 : index
    %67 = vector.load %arg2[%66, %c0_29, %c0_30] : memref<4x8x128xf32, #tpu.memory_space<vmem>>, vector<1x8x128xf32>
    %68 = vector.shape_cast %67 : vector<1x8x128xf32> to vector<8x128xf32>
    %cst_31 = arith.constant dense<0.000000e+00> : vector<8x128xf32>
    %69 = tpu.matmul %45, %3, %cst_31 {dimension_numbers = #tpu.dot_dimension_numbers<[1], [0], [0], [1], [0, 0, 1, 1], [], []>} : vector<8x32xf32>, vector<32x128xf32>, vector<8x128xf32> -> vector<8x128xf32>
    %70 = arith.addf %68, %69 : vector<8x128xf32>
    %71 = vector.extract_strided_slice %70 {offsets = [0, 0], sizes = [8, 32], strides = [1, 1]} : vector<8x128xf32> to vector<8x32xf32>
    %cst_32 = arith.constant 5.000000e-01 : f32
    %72 = vector.broadcast %cst_32 : f32 to vector<8x32xf32>
    %73 = arith.mulf %72, %71 : vector<8x32xf32>
    %74 = math.tanh %73 : vector<8x32xf32>
    %cst_33 = arith.constant 1.000000e+00 : f32
    %75 = vector.broadcast %cst_33 : f32 to vector<8x32xf32>
    %76 = arith.addf %74, %75 : vector<8x32xf32>
    %cst_34 = arith.constant 5.000000e-01 : f32
    %77 = vector.broadcast %cst_34 : f32 to vector<8x32xf32>
    %78 = arith.mulf %77, %76 : vector<8x32xf32>
    %79 = vector.extract_strided_slice %70 {offsets = [0, 32], sizes = [8, 32], strides = [1, 1]} : vector<8x128xf32> to vector<8x32xf32>
    %cst_35 = arith.constant 5.000000e-01 : f32
    %80 = vector.broadcast %cst_35 : f32 to vector<8x32xf32>
    %81 = arith.mulf %80, %79 : vector<8x32xf32>
    %82 = math.tanh %81 : vector<8x32xf32>
    %cst_36 = arith.constant 1.000000e+00 : f32
    %83 = vector.broadcast %cst_36 : f32 to vector<8x32xf32>
    %84 = arith.addf %82, %83 : vector<8x32xf32>
    %cst_37 = arith.constant 5.000000e-01 : f32
    %85 = vector.broadcast %cst_37 : f32 to vector<8x32xf32>
    %86 = arith.mulf %85, %84 : vector<8x32xf32>
    %87 = vector.extract_strided_slice %70 {offsets = [0, 64], sizes = [8, 32], strides = [1, 1]} : vector<8x128xf32> to vector<8x32xf32>
    %88 = math.tanh %87 : vector<8x32xf32>
    %89 = vector.extract_strided_slice %70 {offsets = [0, 96], sizes = [8, 32], strides = [1, 1]} : vector<8x128xf32> to vector<8x32xf32>
    %cst_38 = arith.constant 5.000000e-01 : f32
    %90 = vector.broadcast %cst_38 : f32 to vector<8x32xf32>
    %91 = arith.mulf %90, %89 : vector<8x32xf32>
    %92 = math.tanh %91 : vector<8x32xf32>
    %cst_39 = arith.constant 1.000000e+00 : f32
    %93 = vector.broadcast %cst_39 : f32 to vector<8x32xf32>
    %94 = arith.addf %92, %93 : vector<8x32xf32>
    %cst_40 = arith.constant 5.000000e-01 : f32
    %95 = vector.broadcast %cst_40 : f32 to vector<8x32xf32>
    %96 = arith.mulf %95, %94 : vector<8x32xf32>
    %97 = arith.mulf %86, %43 : vector<8x32xf32>
    %98 = arith.mulf %78, %88 : vector<8x32xf32>
    %99 = arith.addf %97, %98 : vector<8x32xf32>
    %100 = math.tanh %99 : vector<8x32xf32>
    %101 = arith.mulf %96, %100 : vector<8x32xf32>
    %102 = vector.broadcast %4 : vector<1x32xf32> to vector<8x32xf32>
    %103 = arith.mulf %101, %102 : vector<8x32xf32>
    %cst_41 = arith.constant dense<0.000000e+00> : vector<8xf32>
    %104 = vector.multi_reduction <add>, %103, %cst_41 [1] : vector<8x32xf32> to vector<8xf32>
    %105 = vector.shape_cast %104 : vector<8xf32> to vector<8x1xf32>
    %106 = arith.index_cast %c1_i32 : i32 to index
    %c0_42 = arith.constant 0 : index
    %c0_43 = arith.constant 0 : index
    %107 = vector.load %arg3[%106, %c0_42, %c0_43] : memref<4x8x1xf32, #tpu.memory_space<vmem>>, vector<1x8x1xf32>
    %108 = vector.shape_cast %107 : vector<1x8x1xf32> to vector<8x1xf32>
    %109 = arith.addf %105, %108 : vector<8x1xf32>
    %110 = arith.maximumf %54, %109 : vector<8x1xf32>
    %111 = arith.subf %54, %110 : vector<8x1xf32>
    %112 = math.exp %111 : vector<8x1xf32>
    %113 = arith.subf %109, %110 : vector<8x1xf32>
    %114 = math.exp %113 : vector<8x1xf32>
    %115 = arith.mulf %112, %60 : vector<8x1xf32>
    %116 = arith.addf %115, %114 : vector<8x1xf32>
    %117 = vector.broadcast %112 : vector<8x1xf32> to vector<8x32xf32>
    %118 = arith.mulf %117, %65 : vector<8x32xf32>
    %119 = vector.broadcast %114 : vector<8x1xf32> to vector<8x32xf32>
    %120 = arith.mulf %119, %101 : vector<8x32xf32>
    %121 = arith.addf %118, %120 : vector<8x32xf32>
    %c2_i32 = arith.constant 2 : i32
    %122 = arith.index_cast %c2_i32 : i32 to index
    %c0_44 = arith.constant 0 : index
    %c0_45 = arith.constant 0 : index
    %123 = vector.load %arg2[%122, %c0_44, %c0_45] : memref<4x8x128xf32, #tpu.memory_space<vmem>>, vector<1x8x128xf32>
    %124 = vector.shape_cast %123 : vector<1x8x128xf32> to vector<8x128xf32>
    %cst_46 = arith.constant dense<0.000000e+00> : vector<8x128xf32>
    %125 = tpu.matmul %101, %3, %cst_46 {dimension_numbers = #tpu.dot_dimension_numbers<[1], [0], [0], [1], [0, 0, 1, 1], [], []>} : vector<8x32xf32>, vector<32x128xf32>, vector<8x128xf32> -> vector<8x128xf32>
    %126 = arith.addf %124, %125 : vector<8x128xf32>
    %127 = vector.extract_strided_slice %126 {offsets = [0, 0], sizes = [8, 32], strides = [1, 1]} : vector<8x128xf32> to vector<8x32xf32>
    %cst_47 = arith.constant 5.000000e-01 : f32
    %128 = vector.broadcast %cst_47 : f32 to vector<8x32xf32>
    %129 = arith.mulf %128, %127 : vector<8x32xf32>
    %130 = math.tanh %129 : vector<8x32xf32>
    %cst_48 = arith.constant 1.000000e+00 : f32
    %131 = vector.broadcast %cst_48 : f32 to vector<8x32xf32>
    %132 = arith.addf %130, %131 : vector<8x32xf32>
    %cst_49 = arith.constant 5.000000e-01 : f32
    %133 = vector.broadcast %cst_49 : f32 to vector<8x32xf32>
    %134 = arith.mulf %133, %132 : vector<8x32xf32>
    %135 = vector.extract_strided_slice %126 {offsets = [0, 32], sizes = [8, 32], strides = [1, 1]} : vector<8x128xf32> to vector<8x32xf32>
    %cst_50 = arith.constant 5.000000e-01 : f32
    %136 = vector.broadcast %cst_50 : f32 to vector<8x32xf32>
    %137 = arith.mulf %136, %135 : vector<8x32xf32>
    %138 = math.tanh %137 : vector<8x32xf32>
    %cst_51 = arith.constant 1.000000e+00 : f32
    %139 = vector.broadcast %cst_51 : f32 to vector<8x32xf32>
    %140 = arith.addf %138, %139 : vector<8x32xf32>
    %cst_52 = arith.constant 5.000000e-01 : f32
    %141 = vector.broadcast %cst_52 : f32 to vector<8x32xf32>
    %142 = arith.mulf %141, %140 : vector<8x32xf32>
    %143 = vector.extract_strided_slice %126 {offsets = [0, 64], sizes = [8, 32], strides = [1, 1]} : vector<8x128xf32> to vector<8x32xf32>
    %144 = math.tanh %143 : vector<8x32xf32>
    %145 = vector.extract_strided_slice %126 {offsets = [0, 96], sizes = [8, 32], strides = [1, 1]} : vector<8x128xf32> to vector<8x32xf32>
    %cst_53 = arith.constant 5.000000e-01 : f32
    %146 = vector.broadcast %cst_53 : f32 to vector<8x32xf32>
    %147 = arith.mulf %146, %145 : vector<8x32xf32>
    %148 = math.tanh %147 : vector<8x32xf32>
    %cst_54 = arith.constant 1.000000e+00 : f32
    %149 = vector.broadcast %cst_54 : f32 to vector<8x32xf32>
    %150 = arith.addf %148, %149 : vector<8x32xf32>
    %cst_55 = arith.constant 5.000000e-01 : f32
    %151 = vector.broadcast %cst_55 : f32 to vector<8x32xf32>
    %152 = arith.mulf %151, %150 : vector<8x32xf32>
    %153 = arith.mulf %142, %99 : vector<8x32xf32>
    %154 = arith.mulf %134, %144 : vector<8x32xf32>
    %155 = arith.addf %153, %154 : vector<8x32xf32>
    %156 = math.tanh %155 : vector<8x32xf32>
    %157 = arith.mulf %152, %156 : vector<8x32xf32>
    %158 = vector.broadcast %4 : vector<1x32xf32> to vector<8x32xf32>
    %159 = arith.mulf %157, %158 : vector<8x32xf32>
    %cst_56 = arith.constant dense<0.000000e+00> : vector<8xf32>
    %160 = vector.multi_reduction <add>, %159, %cst_56 [1] : vector<8x32xf32> to vector<8xf32>
    %161 = vector.shape_cast %160 : vector<8xf32> to vector<8x1xf32>
    %162 = arith.index_cast %c2_i32 : i32 to index
    %c0_57 = arith.constant 0 : index
    %c0_58 = arith.constant 0 : index
    %163 = vector.load %arg3[%162, %c0_57, %c0_58] : memref<4x8x1xf32, #tpu.memory_space<vmem>>, vector<1x8x1xf32>
    %164 = vector.shape_cast %163 : vector<1x8x1xf32> to vector<8x1xf32>
    %165 = arith.addf %161, %164 : vector<8x1xf32>
    %166 = arith.maximumf %110, %165 : vector<8x1xf32>
    %167 = arith.subf %110, %166 : vector<8x1xf32>
    %168 = math.exp %167 : vector<8x1xf32>
    %169 = arith.subf %165, %166 : vector<8x1xf32>
    %170 = math.exp %169 : vector<8x1xf32>
    %171 = arith.mulf %168, %116 : vector<8x1xf32>
    %172 = arith.addf %171, %170 : vector<8x1xf32>
    %173 = vector.broadcast %168 : vector<8x1xf32> to vector<8x32xf32>
    %174 = arith.mulf %173, %121 : vector<8x32xf32>
    %175 = vector.broadcast %170 : vector<8x1xf32> to vector<8x32xf32>
    %176 = arith.mulf %175, %157 : vector<8x32xf32>
    %177 = arith.addf %174, %176 : vector<8x32xf32>
    %c3_i32 = arith.constant 3 : i32
    %178 = arith.index_cast %c3_i32 : i32 to index
    %c0_59 = arith.constant 0 : index
    %c0_60 = arith.constant 0 : index
    %179 = vector.load %arg2[%178, %c0_59, %c0_60] : memref<4x8x128xf32, #tpu.memory_space<vmem>>, vector<1x8x128xf32>
    %180 = vector.shape_cast %179 : vector<1x8x128xf32> to vector<8x128xf32>
    %cst_61 = arith.constant dense<0.000000e+00> : vector<8x128xf32>
    %181 = tpu.matmul %157, %3, %cst_61 {dimension_numbers = #tpu.dot_dimension_numbers<[1], [0], [0], [1], [0, 0, 1, 1], [], []>} : vector<8x32xf32>, vector<32x128xf32>, vector<8x128xf32> -> vector<8x128xf32>
    %182 = arith.addf %180, %181 : vector<8x128xf32>
    %183 = vector.extract_strided_slice %182 {offsets = [0, 0], sizes = [8, 32], strides = [1, 1]} : vector<8x128xf32> to vector<8x32xf32>
    %cst_62 = arith.constant 5.000000e-01 : f32
    %184 = vector.broadcast %cst_62 : f32 to vector<8x32xf32>
    %185 = arith.mulf %184, %183 : vector<8x32xf32>
    %186 = math.tanh %185 : vector<8x32xf32>
    %cst_63 = arith.constant 1.000000e+00 : f32
    %187 = vector.broadcast %cst_63 : f32 to vector<8x32xf32>
    %188 = arith.addf %186, %187 : vector<8x32xf32>
    %cst_64 = arith.constant 5.000000e-01 : f32
    %189 = vector.broadcast %cst_64 : f32 to vector<8x32xf32>
    %190 = arith.mulf %189, %188 : vector<8x32xf32>
    %191 = vector.extract_strided_slice %182 {offsets = [0, 32], sizes = [8, 32], strides = [1, 1]} : vector<8x128xf32> to vector<8x32xf32>
    %cst_65 = arith.constant 5.000000e-01 : f32
    %192 = vector.broadcast %cst_65 : f32 to vector<8x32xf32>
    %193 = arith.mulf %192, %191 : vector<8x32xf32>
    %194 = math.tanh %193 : vector<8x32xf32>
    %cst_66 = arith.constant 1.000000e+00 : f32
    %195 = vector.broadcast %cst_66 : f32 to vector<8x32xf32>
    %196 = arith.addf %194, %195 : vector<8x32xf32>
    %cst_67 = arith.constant 5.000000e-01 : f32
    %197 = vector.broadcast %cst_67 : f32 to vector<8x32xf32>
    %198 = arith.mulf %197, %196 : vector<8x32xf32>
    %199 = vector.extract_strided_slice %182 {offsets = [0, 64], sizes = [8, 32], strides = [1, 1]} : vector<8x128xf32> to vector<8x32xf32>
    %200 = math.tanh %199 : vector<8x32xf32>
    %201 = vector.extract_strided_slice %182 {offsets = [0, 96], sizes = [8, 32], strides = [1, 1]} : vector<8x128xf32> to vector<8x32xf32>
    %cst_68 = arith.constant 5.000000e-01 : f32
    %202 = vector.broadcast %cst_68 : f32 to vector<8x32xf32>
    %203 = arith.mulf %202, %201 : vector<8x32xf32>
    %204 = math.tanh %203 : vector<8x32xf32>
    %cst_69 = arith.constant 1.000000e+00 : f32
    %205 = vector.broadcast %cst_69 : f32 to vector<8x32xf32>
    %206 = arith.addf %204, %205 : vector<8x32xf32>
    %cst_70 = arith.constant 5.000000e-01 : f32
    %207 = vector.broadcast %cst_70 : f32 to vector<8x32xf32>
    %208 = arith.mulf %207, %206 : vector<8x32xf32>
    %209 = arith.mulf %198, %155 : vector<8x32xf32>
    %210 = arith.mulf %190, %200 : vector<8x32xf32>
    %211 = arith.addf %209, %210 : vector<8x32xf32>
    %212 = math.tanh %211 : vector<8x32xf32>
    %213 = arith.mulf %208, %212 : vector<8x32xf32>
    %214 = vector.broadcast %4 : vector<1x32xf32> to vector<8x32xf32>
    %215 = arith.mulf %213, %214 : vector<8x32xf32>
    %cst_71 = arith.constant dense<0.000000e+00> : vector<8xf32>
    %216 = vector.multi_reduction <add>, %215, %cst_71 [1] : vector<8x32xf32> to vector<8xf32>
    %217 = vector.shape_cast %216 : vector<8xf32> to vector<8x1xf32>
    %218 = arith.index_cast %c3_i32 : i32 to index
    %c0_72 = arith.constant 0 : index
    %c0_73 = arith.constant 0 : index
    %219 = vector.load %arg3[%218, %c0_72, %c0_73] : memref<4x8x1xf32, #tpu.memory_space<vmem>>, vector<1x8x1xf32>
    %220 = vector.shape_cast %219 : vector<1x8x1xf32> to vector<8x1xf32>
    %221 = arith.addf %217, %220 : vector<8x1xf32>
    %222 = arith.maximumf %166, %221 : vector<8x1xf32>
    %223 = arith.subf %166, %222 : vector<8x1xf32>
    %224 = math.exp %223 : vector<8x1xf32>
    %225 = arith.subf %221, %222 : vector<8x1xf32>
    %226 = math.exp %225 : vector<8x1xf32>
    %227 = arith.mulf %224, %172 : vector<8x1xf32>
    %228 = arith.addf %227, %226 : vector<8x1xf32>
    %229 = vector.broadcast %224 : vector<8x1xf32> to vector<8x32xf32>
    %230 = arith.mulf %229, %177 : vector<8x32xf32>
    %231 = vector.broadcast %226 : vector<8x1xf32> to vector<8x32xf32>
    %232 = arith.mulf %231, %213 : vector<8x32xf32>
    %233 = arith.addf %230, %232 : vector<8x32xf32>
    %c4_i32 = arith.constant 4 : i32
    %c0_74 = arith.constant 0 : index
    %c0_75 = arith.constant 0 : index
    %234 = vector.load %arg9[%c0_74, %c0_75] : memref<8x32xf32, #tpu.memory_space<vmem>>, vector<8x32xf32>
    tpu.vector_store %arg9[%c0_74, %c0_75], %213 {strides = array<i32>} : memref<8x32xf32, #tpu.memory_space<vmem>>, vector<8x32xf32>,
    %c0_76 = arith.constant 0 : index
    %c0_77 = arith.constant 0 : index
    %235 = vector.load %arg10[%c0_76, %c0_77] : memref<8x32xf32, #tpu.memory_space<vmem>>, vector<8x32xf32>
    tpu.vector_store %arg10[%c0_76, %c0_77], %211 {strides = array<i32>} : memref<8x32xf32, #tpu.memory_space<vmem>>, vector<8x32xf32>,
    %c0_78 = arith.constant 0 : index
    %c0_79 = arith.constant 0 : index
    %236 = vector.load %arg11[%c0_78, %c0_79] : memref<8x1xf32, #tpu.memory_space<vmem>>, vector<8x1xf32>
    tpu.vector_store %arg11[%c0_78, %c0_79], %222 {strides = array<i32>} : memref<8x1xf32, #tpu.memory_space<vmem>>, vector<8x1xf32>,
    %c0_80 = arith.constant 0 : index
    %c0_81 = arith.constant 0 : index
    %237 = vector.load %arg12[%c0_80, %c0_81] : memref<8x1xf32, #tpu.memory_space<vmem>>, vector<8x1xf32>
    tpu.vector_store %arg12[%c0_80, %c0_81], %228 {strides = array<i32>} : memref<8x1xf32, #tpu.memory_space<vmem>>, vector<8x1xf32>,
    %c0_82 = arith.constant 0 : index
    %c0_83 = arith.constant 0 : index
    %238 = vector.load %arg13[%c0_82, %c0_83] : memref<8x32xf32, #tpu.memory_space<vmem>>, vector<8x32xf32>
    tpu.vector_store %arg13[%c0_82, %c0_83], %233 {strides = array<i32>} : memref<8x32xf32, #tpu.memory_space<vmem>>, vector<8x32xf32>,
    %c2_i32_84 = arith.constant 2 : i32
    %239 = arith.cmpi eq, %arg1, %c2_i32_84 : i32
    %240 = arith.extui %239 : i1 to i32
    %c0_i32_85 = arith.constant 0 : i32
    %241 = arith.cmpi ne, %240, %c0_i32_85 : i32
    scf.if %241 {
      %242 = vector.broadcast %228 : vector<8x1xf32> to vector<8x32xf32>
      %243 = arith.divf %233, %242 : vector<8x32xf32>
      %c0_86 = arith.constant 0 : index
      %c0_87 = arith.constant 0 : index
      %244 = vector.load %arg6[%c0_86, %c0_87] : memref<32x128xf32, #tpu.memory_space<vmem>>, vector<32x128xf32>
      %cst_88 = arith.constant dense<0.000000e+00> : vector<8x128xf32>
      %245 = tpu.matmul %243, %244, %cst_88 {dimension_numbers = #tpu.dot_dimension_numbers<[1], [0], [0], [1], [0, 0, 1, 1], [], []>} : vector<8x32xf32>, vector<32x128xf32>, vector<8x128xf32> -> vector<8x128xf32>
      %c0_89 = arith.constant 0 : index
      %c0_90 = arith.constant 0 : index
      %246 = vector.load %arg7[%c0_89, %c0_90] : memref<1x128xf32, #tpu.memory_space<vmem>>, vector<1x128xf32>
      %247 = vector.broadcast %246 : vector<1x128xf32> to vector<8x128xf32>
      %248 = arith.addf %245, %247 : vector<8x128xf32>
      %c0_91 = arith.constant 0 : index
      %c0_92 = arith.constant 0 : index
      %249 = vector.load %arg8[%c0_91, %c0_92] : memref<8x128xf32, #tpu.memory_space<vmem>>, vector<8x128xf32>
      tpu.vector_store %arg8[%c0_91, %c0_92], %248 {strides = array<i32>} : memref<8x128xf32, #tpu.memory_space<vmem>>, vector<8x128xf32>,
    } else {
    }
    return
  }
  func.func @transform_0(%arg0: i32, %arg1: i32) -> (i32, i32, i32) {
    %c0_i32 = arith.constant 0 : i32
    %c0_i32_0 = arith.constant 0 : i32
    return %arg1, %arg0, %c0_i32 : i32, i32, i32
  }
  func.func @transform_1(%arg0: i32, %arg1: i32) -> (i32, i32, i32) {
    %c0_i32 = arith.constant 0 : i32
    %c0_i32_0 = arith.constant 0 : i32
    return %arg1, %arg0, %c0_i32 : i32, i32, i32
  }
  func.func @transform_2(%arg0: i32, %arg1: i32) -> (i32, i32) {
    %c0_i32 = arith.constant 0 : i32
    %c0_i32_0 = arith.constant 0 : i32
    %c0_i32_1 = arith.constant 0 : i32
    return %c0_i32, %c0_i32_0 : i32, i32
  }
  func.func @transform_3(%arg0: i32, %arg1: i32) -> (i32, i32) {
    %c0_i32 = arith.constant 0 : i32
    %c0_i32_0 = arith.constant 0 : i32
    %c0_i32_1 = arith.constant 0 : i32
    return %c0_i32, %c0_i32_0 : i32, i32
  }
  func.func @transform_4(%arg0: i32, %arg1: i32) -> (i32, i32) {
    %c0_i32 = arith.constant 0 : i32
    %c0_i32_0 = arith.constant 0 : i32
    %c0_i32_1 = arith.constant 0 : i32
    return %c0_i32, %c0_i32_0 : i32, i32
  }
  func.func @transform_5(%arg0: i32, %arg1: i32) -> (i32, i32) {
    %c0_i32 = arith.constant 0 : i32
    %c0_i32_0 = arith.constant 0 : i32
    %c0_i32_1 = arith.constant 0 : i32
    return %c0_i32, %c0_i32_0 : i32, i32
  }
  func.func @transform_6(%arg0: i32, %arg1: i32) -> (i32, i32) {
    %c0_i32 = arith.constant 0 : i32
    %c0_i32_0 = arith.constant 0 : i32
    return %arg0, %c0_i32 : i32, i32
  }
}

</mosaic_0001>

<bundles_post_ra>
// kernel: tpu_custom_call.1
= control target key start
LH: loop header
LB: loop body
LE: loop exit
PB: predicated region body
PF: predicated region fallthrough
CT: control target
= control target key end

     0   :  { %s2091_s0 = inlined_call_operand.vmem [shape: f32[12,16,128], index: 0, kind: input, shape index: {}]   ;;  %s2092_s1 = inlined_call_operand.vmem [shape: f32[12,16,1], index: 1, kind: input, shape index: {}]   ;;  %s2093_s2 = inlined_call_operand.hbm [shape: f32[32,128], index: 2, kind: input, shape index: {}]   ;;  %s2094_s3 = inlined_call_operand.vmem [shape: f32[1,32], index: 3, kind: input, shape index: {}]   ;;  %s2095_s4 = inlined_call_operand.hbm [shape: f32[32,128], index: 4, kind: input, shape index: {}]   ;;  %s2096_s5 = inlined_call_operand.vmem [shape: f32[1,128], index: 5, kind: input, shape index: {}]   ;;  %s2097_s6 = inlined_call_operand.hbm [shape: f32[16,128], index: 6, kind: output, shape index: {}]  }
   0x1   :  { %2106 = sst [smem:[#allocation25_spill]] %s2093_s2 }
   0x2   :  { %11 = vsyncpa [#allocation10], 0 }
   0x3   :  { %12 = vsyncpa [#allocation13], 0 }
   0x4   :  { %13 = vsyncpa [#allocation11], 0 }
   0x5   :  { %15 = vsyncpa [#allocation11 + $0x1], 0  ;;  %s1748_s21 = smov 0   ;;  %s1750_s22 = smov 0  }
   0x6   :  { %s1752_s23 = smov 0   ;;  %s1754_s24 = smov 0  }
   0x7   :  { %s1756_s25 = smov 0   ;;  %s1758_s26 = smov 0  }
   0x8   :  { %s1760_s27 = smov 0   ;;  %s1762_s28 = smov 0  }
   0x9   :  { %s1764_s29 = smov 0   ;;  %s1766_s30 = smov 0  }
   0xa LB: > { %2107 = sst [smem:[#allocation18_spill]] %s1659_s21  ;;  %s1240_s7 = sadd.s32 4294967295, %s1695_s30   ;;  %s1695_s30 = sphi %s1766_s30, %s21_s30   ;;  %s1691_s29 = sphi %s1764_s29, %s2138_s29   ;;  %s1687_s28 = sphi %s1762_s28, %s2137_s28   ;;  %s1683_s27 = sphi %s1760_s27, %s2136_s27   ;;  %s1679_s26 = sphi %s1758_s26, %s2135_s26   ;;  %s1675_s25 = sphi %s1756_s25, %s2134_s25   ;;  %s1671_s24 = sphi %s1754_s24, %s2133_s24   ;;  %s1667_s23 = sphi %s1752_s23, %s2127_s23   ;;  %s1663_s22 = sphi %s1750_s22, %s2132_s22   ;;  %s1659_s21 = sphi %s1748_s21, %s2131_s21  }
   0xb   : > { %2108 = sst [smem:[#allocation19_spill]] %s1667_s23  ;;  %s1241_s8 = sadd.s32 4294967294, %s1695_s30  }
   0xc   : > { %s30_s9 = sadd.s32 1, %s1687_s28  ;;  %s33_s10 = sadd.s32 1, %s1691_s29 }
   0xd   : > { %p31_p0 = scmp.ge.s32.totalorder %s30_s9, 3  ;;  %s42_s11 = sadd.s32 1, %s1675_s25 }
   0xe   : > { %p49_p1 = scmp.ne.s32.totalorder %s1675_s25, %s1671_s24  ;;  %p50_p2 = scmp.eq.s32.totalorder %s1695_s30, 0 }
   0xf   : > { %s2140_s9 = smov (%p31_p0, %s30_s9), 0  ;;  %s2142_s10 = smov (!%p31_p0, %s33_s10), %s1691_s29 }
  0x10   : > { %2109 = sst [smem:[#allocation20_spill]] %s2140_s9  ;;  %s37_s12 = ssub.s32 %s1687_s28, %s2140_s9 }
  0x11   : > { %p1811_p3 = por %p50_p2, %p49_p1  ;;  %p35_p4 = scmp.ge.s32.totalorder %s2142_s10, 2 }
  0x12   : > { %s180_s14 = sadd.s32 1, %s1667_s23  ;;  %p190_p5 = scmp.ne.s32.totalorder %s1667_s23, %s1663_s22 }
  0x13   : > { %p191_p6 = scmp.eq.s32.totalorder %s1240_s7, 5  ;;  %s2144_s10 = smov (%p35_p4, %s2142_s10), 0 }
  0x14   : > { %2111 = sst [smem:[#allocation21_spill]] %s2144_s10  ;;  %p196_p8 = scmp.ne.s32.totalorder %s1663_s22, %s1659_s21 }
  0x15   : > { %p1820_p7 = por %p191_p6, %p190_p5  ;;  %s38_s16 = ssub.s32 %s1691_s29, %s2144_s10 }
  0x16   : > { %p197_p9 = scmp.eq.s32.totalorder %s1241_s8, 5  ;;  %s39_s17 = sor.u32 %s38_s16, %s37_s12 }
  0x17   : > { %s2112_s15 = scalar_select %p1820_p7, 1, 0 }
  0x18   : > { %p178_p10 = scmp.eq.s32.totalorder %s38_s16, 0  ;;  %p40_p11 = scmp.eq.s32.totalorder %s39_s17, 0 }
  0x19   : > { %p1828_p12 = por %p197_p9, %p196_p8  ;;  %p1242_p13 = scmp.ge.s32.totalorder %s1695_s30, 1 }
  0x1a   : > { %s1833_s19 = scalar_select %p178_p10, %s1667_s23, %s180_s14  }
  0x1b   : > { %s2113_s18 = scalar_select %p1828_p12, 1, 0 }
  0x1c   : > { %2115 = sst [smem:[#allocation23_spill]] %s1833_s19  ;;  %p204_p0 = scmp.lt.s32.totalorder %s1695_s30, 7 }
  0x1d   : > { %2114 = sst [smem:[#allocation22_spill]] %s2113_s18  ;;  %p1840_p1 = scmp.eq.s32.totalorder %s1240_s7, 0 }
  0x1e   : > { %s1836_s20 = scalar_select %p40_p11, %s1675_s25, %s42_s11  }
  0x1f   : > { %s2117_s9 = scalar_select %p1840_p1, 1, 0 }
  0x20   : > { %2116 = sst [smem:[#allocation24_spill]] %s1836_s20  ;;  %p1844_p2 = pnand %p1242_p13, %p204_p0 }
  0x21   : > { %s1697_s12 = smov [#allocation9]   ;;  %s1698_s7 = smov [#allocation12]  }
  0x22   : > { %s216_s16 = sshll.u32 %s1697_s12, 4  ;;  %p1371_p4 = pneg %p1844_p2  ;;  %s217_s16 = int_to_ptr.vmem [resolvable:$true] %s216_s16 }
  0x23   : > { %s232_s14 = sshll.u32 %s1698_s7, 4  ;;  %s1538_s17 = scalar_lea.vmem %s217_s16, 512  ;;  %s233_s14 = int_to_ptr.vmem [resolvable:$true] %s232_s14 }
  0x24   : > { %p1852_p5 = pnand %p1840_p1, %p1371_p4  ;;  %p1539_p8 = scmp.ne.s32.totalorder %s217_s16, %s1538_s17 }
  0x25   : > { %p1546_p11 = scmp.lt.s32.totalorder %s217_s16, %s217_s16  ;;  %p1547_p13 = scmp.lt.s32.totalorder %s1538_s17, %s1538_s17 }
  0x26   : > { %p1529_p6 = pneg %p1852_p5 }
  0x27   : > { %p1548_p0 = por %p1547_p13, %p1546_p11 }
  0x28   : > { %p1541_p9 = pnand %p1539_p8, %p1529_p6 }
  0x2a   : > { %p1542_p10 = pneg %p1541_p9 }
  0x2c   : > { %p1549_p4 = pnand %p1548_p0, %p1542_p10 }
  0x2e   : > { %1552 = shalt.err (!%p1549_p4)
}
  0x2f   : > { %s1699_s12 = smov 128   ;;  %s1700_s10 = smov 8  }
  0x30   : > { %s2120_s2 = sld [smem:[#allocation25_spill]]  ;;  %s1564_s19 = scalar_lea.vmem %s233_s14, 512 }
  0x31   : > { %p1565_p12 = scmp.ne.s32.totalorder %s233_s14, %s1564_s19  ;;  %p1572_p7 = scmp.lt.s32.totalorder %s233_s14, %s233_s14 }
  0x32   : > { %p1573_p1 = scmp.lt.s32.totalorder %s1564_s19, %s1564_s19 }
  0x33   : > { %p1567_p8 = pnand %p1565_p12, %p1529_p6 }
  0x34   : > { %p1574_p11 = por %p1573_p1, %p1572_p7 }
  0x35   : > { %p1568_p9 = pneg %p1567_p8 }
  0x36   : > { %1374 = dma.hbm_to_vmem [thread:$0]  (!%p1852_p5), %s2120_s2, 512, %s217_s16, [#allocation10], %s1699_s12, %s1699_s12, %s1700_s10  }
  0x37   : > { %p1575_p10 = pnand %p1574_p11, %p1568_p9 }
  0x39   : > { %1578 = shalt.err (!%p1575_p10)
}
  0x3a   : > { %1377 = dma.hbm_to_vmem [thread:$0]  (!%p1852_p5), %s2095_s4, 512, %s233_s14, [#allocation13], %s1699_s12, %s1699_s12, %s1700_s10  }
  0x3b   : > { %p1245_p13 = scmp.ge.s32.totalorder %s1695_s30, 6 }
  0x3d   : > { %245 = sbr.rel (%p1245_p13) target bundleno = 82 (0x52), region = 32 }
  0x42   : > { %248 = sbr.rel (!%p1811_p3) target bundleno = 74 (0x4a), region = 36  ;;  %s250_s20 = sand.u32 (%p1811_p3), 1, %s1675_s25  }
  0x43   : > { %s1279_s19 = sshll.u32 (%p1811_p3), %s1687_s28, 3  ;;  %s1246_s16 = sshll.u32 (%p1811_p3), %s250_s20, 5 }
  0x44   : > { %s255_s7 = sadd.s32 (%p1811_p3), %s1691_s29, %s1279_s19  ;;  %s252_s23 = scalar_lea.vmem (%p1811_p3), [#allocation7], %s1246_s16 }
  0x45   : > { %s1249_s2 = sshll.u32 (%p1811_p3), %s255_s7, 3 }
  0x46   : > { %s257_s21 = scalar_lea.vmem (%p1811_p3), %s2091_s0, %s1249_s2 }
  0x47   : > { %v292_v0 = vld [vmem:[%s257_s21] sm:$0xff]  ;;  %v294_v1 = vld [vmem:[%s257_s21 + $0x10] sm:$0xff] }
  0x48   : > { %v296_v2 = vld [vmem:[%s257_s21 + $0x20] sm:$0xff]  ;;  %293 = vst [vmem:[%s252_s23] sm:$0xff] %v292_v0  ;;  %295 = vst [vmem:[%s252_s23 + $0x8] sm:$0xff] %v294_v1  ;;  %v298_v3 = vld [vmem:[%s257_s21 + $0x30] sm:$0xff] }
  0x49   : > { %297 = vst [vmem:[%s252_s23 + $0x10] sm:$0xff] %v296_v2  ;;  %299 = vst [vmem:[%s252_s23 + $0x18] sm:$0xff] %v298_v3 }
  0x4a PF: > { %305 = sbr.rel (!%p1811_p3) target bundleno = 82 (0x52), region = 74  ;;  %s307_s10 = sand.u32 (%p1811_p3), 1, %s1675_s25  }
  0x4b   : > { %s1280_s14 = sshll.u32 (%p1811_p3), %s1687_s28, 3  ;;  %s1250_s18 = sshll.u32 (%p1811_p3), %s307_s10, 5 }
  0x4c   : > { %s312_s2 = sadd.s32 (%p1811_p3), %s1691_s29, %s1280_s14  ;;  %s309_s21 = scalar_lea.vmem (%p1811_p3), [#allocation8], %s1250_s18 }
  0x4d   : > { %s1253_s12 = sshll.u32 (%p1811_p3), %s312_s2, 3 }
  0x4e   : > { %s314_s19 = scalar_lea.vmem (%p1811_p3), %s2092_s1, %s1253_s12 }
  0x4f   : > { %v349_v4 = vld [vmem:[%s314_s19] sm:$0xff]  ;;  %v351_v5 = vld [vmem:[%s314_s19 + $0x10] sm:$0xff] }
  0x50   : > { %v353_v6 = vld [vmem:[%s314_s19 + $0x20] sm:$0xff]  ;;  %350 = vst [vmem:[%s309_s21] sm:$0xff] %v349_v4  ;;  %352 = vst [vmem:[%s309_s21 + $0x8] sm:$0xff] %v351_v5  ;;  %v355_v7 = vld [vmem:[%s314_s19 + $0x30] sm:$0xff] }
  0x51   : > { %354 = vst [vmem:[%s309_s21 + $0x10] sm:$0xff] %v353_v6  ;;  %356 = vst [vmem:[%s309_s21 + $0x18] sm:$0xff] %v355_v7 }
  0x52 PF: > { %365 = sbr.rel (%p1844_p2) target bundleno = 3638 (0xe36), region = 112  ;;  %s368_s13 = sand.u32 (!%p1844_p2), 1, %s1671_s24  }
  0x53   : > { %s1255_s16 = sshll.u32 (!%p1844_p2), %s368_s13, 5  ;;  %p2121_p3 = scmp.ne.s32.totalorder (!%p1844_p2), %s2117_s9, 0 }
  0x54   : > { %s1894_s7 = scalar_lea.vmem (!%p1844_p2), [#allocation7], %s1255_s16  ;;  %s1896_s11 = scalar_lea.vmem (!%p1844_p2), [#allocation8], %s1255_s16 }
  0x57   : > { %1646 = dma.done.wait (%p2121_p3), [#allocation10], 512  }
  0x58   : > { %1648 = vsyncadd (%p2121_p3), [#allocation10], 4294966784 }
  0x59   : > { %1650 = dma.done.wait (%p2121_p3), [#allocation13], 512  }
  0x5a   : > { %1652 = vsyncadd (%p2121_p3), [#allocation13], 4294966784  ;;  %s413_s8 = sand.u32 1, %s1663_s22   ;;  %p1260_p7 = scmp.ne.s32.totalorder %s1679_s26, 0 }
  0x5b   : > { %s1909_s24 = sshll.u32 %s413_s8, 3 }
  0x5c   : > { %s415_s23 = scalar_lea.vmem [#allocation14], %s1909_s24  ;;  %421 = sbr.rel (%p1260_p7) target bundleno = 101 (0x65), region = 132 }
  0x61   : > { %vm422_vm0 = vcmask 261120   ;;  %vm425_vm1 = vcmask 7168   ;;  %v1701_v8 = vmov 0.0   ;;  %v1702_v9 = vmov -1e+30  }
  0x62   : > { %423 = vst.msk [vmem:[#allocation2] sm:$0xff] %vm422_vm0, %v1701_v8  ;;  %424 = vst.msk [vmem:[#allocation3] sm:$0xff] %vm422_vm0, %v1701_v8 }
  0x63   : > { %428 = vst.msk [vmem:[#allocation6] sm:$0xff] %vm422_vm0, %v1701_v8 }
  0x64   : > { %426 = vst.msk [vmem:[#allocation4] sm:$0xff] %vm425_vm1, %v1702_v9  ;;  %427 = vst.msk [vmem:[#allocation5] sm:$0xff] %vm425_vm1, %v1701_v8 }
  0x65 PF: > { %v1913_v10 = vld [vmem:[#allocation9 + $0x18] sm:$0xff]  ;;  %v1703_v11 = vmov 0.0   ;;  %v1916_v12 = vld [vmem:[#allocation9 + $0x10] sm:$0xff]  ;;  %vm1704_vm2 = vmmov 0   ;;  %v1923_v13 = vld [vmem:[#allocation9 + $0x8] sm:$0xff]  ;;  %vm440_vm3 = vcmask 261120  }
  0x66   : > { %1306 = vmatprep.subr.mxu0 %v1703_v11  ;;  %1314 = vmatprep.mubr.msk.f32.mxu0 %vm1704_vm2, %v1703_v11  ;;  %v429_v14 = vld [vmem:[#allocation9] sm:$0xff]  ;;  %s1705_s9 = smov 64   ;;  %s1706_s10 = smov 32   ;;  %v1263_v36 = vld [vmem:[%s1894_s7 + $0x8] sm:$0xff]  ;;  %v1266_v54 = vld [vmem:[%s1894_s7 + $0x10] sm:$0xff]  ;;  %vm1006_vm4 = vcmask 7168  }
  0x67   : > { %1307 = vmatpush3.msra.mxu0 %v1913_v10  ;;  %1317 = vmatprep.subr.mxu1 %v1703_v11  ;;  %v439_v16 = vld [vmem:[%s1894_s7] sm:$0xff]  ;;  %v1269_v8 = vld [vmem:[%s1894_s7 + $0x18] sm:$0xff]  ;;  %s1707_s2 = smov 96   ;;  %p1272_p12 = scmp.ne.s32.totalorder %s1679_s26, 2 }
  0x68   : > { %1308 = vmatprep.subr.mxu0 %v1703_v11  ;;  %1318 = vmatpush3.msra.mxu1 %v1913_v10 }
  0x69   : > { %1309 = vmatpush3.msra.mxu0 %v1916_v12  ;;  %1319 = vmatprep.subr.mxu1 %v1703_v11  ;;  %v434_v15 = vld [vmem:[#allocation2] sm:$0xff]  ;;  %v435_v21 = vld [vmem:[#allocation3] sm:$0xff] }
  0x6a   : > { %1310 = vmatprep.subr.mxu0 %v1703_v11  ;;  %1320 = vmatpush3.msra.mxu1 %v1916_v12 }
  0x6b   : > { %1311 = vmatpush3.msra.mxu0 %v1923_v13  ;;  %1321 = vmatprep.subr.mxu1 %v1703_v11 }
  0x6c   : > { %1312 = vmatprep.subr.mxu0 %v1703_v11  ;;  %1322 = vmatpush3.msra.mxu1 %v1923_v13 }
  0x6d   : > { %1313 = vmatpush3.msra.mxu0 %v429_v14  ;;  %1323 = vmatprep.subr.mxu1 %v1703_v11 }
  0x6e   : > { %1315 = vmatmul.mubr.msk.f32.vlgmr.msra.gmra.mxu0 %vm440_vm3, %v434_v15  ;;  %1324 = vmatpush3.msra.mxu1 %v429_v14 }
  0x6f   : > { %1325 = vmatprep.mubr.msk.f32.mxu1 %vm1704_vm2, %v1703_v11  ;;  %1328 = vmatprep.subr.mxu0 %v1703_v11 }
  0x70   : > { %1329 = vmatpush3.msra.mxu0 %v1913_v10  ;;  %1336 = vmatprep.mubr.msk.f32.mxu0 %vm1704_vm2, %v1703_v11 }
  0x71   : > { %1330 = vmatprep.subr.mxu0 %v1703_v11  ;;  %1339 = vmatprep.subr.mxu1 %v1703_v11 }
  0x72   : > { %1331 = vmatpush3.msra.mxu0 %v1916_v12 }
  0x73   : > { %1332 = vmatprep.subr.mxu0 %v1703_v11 }
  0x74   : > { %1333 = vmatpush3.msra.mxu0 %v1923_v13 }
  0x75   : > { %1334 = vmatprep.subr.mxu0 %v1703_v11 }
  0x76   : > { %1335 = vmatpush3.msra.mxu0 %v429_v14 }
 0x12e   : > { %v510_v17 = vpop.f32.mrf.mxu0 }
 0x12f   : > { %v514_v18 = vadd.f32 %v510_v17, %v439_v16 }
 0x130   : > { %v1316_v19 = vpop.f32.mrf.mxu0 }
 0x131   : > { %1484 = vtanh.f32 %v514_v18  ;;  %v515_v22 = vmul.f32 0.5, %v514_v18 }
 0x133   : > { %1486 = vtanh.f32 %v515_v22 }
 0x13e   : > { %v1485_v20 = vpop.eup %1484 }
 0x13f   : > { %526 = vrot.lane.b32.xlu0 %v1485_v20, %s1705_s9 }
 0x140   : > { %v1487_v23 = vpop.eup %1486 }
 0x141   : > { %v517_v24 = vadd.f32 1.0, %v1487_v23 }
 0x143   : > { %521 = vrot.lane.b32.xlu0 %v435_v21, %s1706_s10  ;;  %v518_v25 = vmul.f32 0.5, %v517_v24 }
 0x1b1   : > { %v527_v26 = vpop.permute.xlu0 %526 }
 0x1b2   : > { %v529_v27 = vmul.f32 %v527_v26, %v518_v25 }
 0x1b4   : > { %531 = vrot.lane.b32.xlu1 %v529_v27, %s1706_s10 }
 0x1b5   : > { %v522_v28 = vpop.permute.xlu0 %521 }
 0x1b6   : > { %v524_v29 = vmul.f32 %v522_v28, %v518_v25 }
 0x226   : > { %v532_v30 = vpop.permute.xlu1 %531 }
 0x227   : > { %v534_v31 = vadd.f32 %v532_v30, %v524_v29  ;;  %v1708_v30 = vmov 0  }
 0x228   : > { %1482 = vset.pattern.permute.xlu0 %v1708_v30  ;;  %1483 = vset.pattern.permute.xlu1 %v1708_v30 }
 0x229   : > { %1488 = vtanh.f32 %v534_v31 }
 0x236   : > { %v1489_v32 = vpop.eup %1488 }
 0x237   : > { %537 = vrot.lane.b32.xlu1 %v1489_v32, %s1705_s9 }
 0x2a9   : > { %v538_v33 = vpop.permute.xlu1 %537 }
 0x2aa   : > { %v1953_v34 = vmul.f32 %v538_v33, %v518_v25 }
 0x2ac   : > { %588 = vrot.lane.b32.xlu0 %v1953_v34, %s1706_s10 }
 0x31e   : > { %v589_v35 = vpop.permute.xlu0 %588 }
 0x31f   : > { %1326 = vmatmul.mubr.msk.f32.vlgmr.msra.gmra.mxu1 %vm440_vm3, %v589_v35 }
 0x320   : > { %1340 = vmatpush3.msra.mxu1 %v1913_v10  ;;  %1347 = vmatprep.mubr.msk.f32.mxu1 %vm1704_vm2, %v1703_v11 }
 0x321   : > { %1341 = vmatprep.subr.mxu1 %v1703_v11 }
 0x322   : > { %1342 = vmatpush3.msra.mxu1 %v1916_v12 }
 0x323   : > { %1343 = vmatprep.subr.mxu1 %v1703_v11 }
 0x324   : > { %1344 = vmatpush3.msra.mxu1 %v1923_v13  ;;  %v1262_v13 = vld [vmem:[%s2094_s3] ss:$0 sm:$0xff] }
 0x325   : > { %1345 = vmatprep.subr.mxu1 %v1703_v11 }
 0x326   : > { %1346 = vmatpush3.msra.mxu1 %v429_v14 }
 0x3df   : > { %v658_v37 = vpop.f32.mrf.mxu1 }
 0x3e0   : > { %v662_v38 = vadd.f32 %v1263_v36, %v658_v37  ;;  %v557_v36 = vld [vmem:[%s1896_s11] sm:$0xff] }
 0x3e1   : > { %v1327_v39 = vpop.f32.mrf.mxu1 }
 0x3e2   : > { %1490 = vtanh.f32 %v662_v38  ;;  %v663_v41 = vmul.f32 0.5, %v662_v38 }
 0x3e4   : > { %1492 = vtanh.f32 %v663_v41 }
 0x3ef   : > { %v1491_v40 = vpop.eup %1490 }
 0x3f0   : > { %670 = vrot.lane.b32.xlu1 %v1491_v40, %s1705_s9  ;;  %v436_v40 = vld [vmem:[#allocation4] sm:$0xff] }
 0x3f1   : > { %v1493_v42 = vpop.eup %1492 }
 0x3f2   : > { %v665_v43 = vadd.f32 1.0, %v1493_v42 }
 0x3f4   : > { %v666_v44 = vmul.f32 0.5, %v665_v43 }
 0x3f6   : > { %v668_v47 = vmul.f32 %v666_v44, %v534_v31 }
 0x462   : > { %v671_v45 = vpop.permute.xlu1 %670 }
 0x463   : > { %v673_v46 = vmul.f32 %v671_v45, %v666_v44 }
 0x465   : > { %675 = vrot.lane.b32.xlu0 %v673_v46, %s1706_s10 }
 0x4d7   : > { %v676_v48 = vpop.permute.xlu0 %675 }
 0x4d8   : > { %v678_v49 = vadd.f32 %v676_v48, %v668_v47 }
 0x4da   : > { %1494 = vtanh.f32 %v678_v49 }
 0x4e7   : > { %v1495_v50 = vpop.eup %1494 }
 0x4e8   : > { %681 = vrot.lane.b32.xlu1 %v1495_v50, %s1705_s9 }
 0x55a   : > { %v682_v51 = vpop.permute.xlu1 %681 }
 0x55b   : > { %v1970_v52 = vmul.f32 %v682_v51, %v666_v44 }
 0x55d   : > { %725 = vrot.lane.b32.xlu0 %v1970_v52, %s1706_s10 }
 0x5cf   : > { %v726_v53 = vpop.permute.xlu0 %725 }
 0x5d0   : > { %1337 = vmatmul.mubr.msk.f32.vlgmr.msra.gmra.mxu0 %vm440_vm3, %v726_v53  ;;  %v1265_v53 = vld [vmem:[%s1896_s11 + $0x8] sm:$0xff] }
 0x690   : > { %v795_v55 = vpop.f32.mrf.mxu0 }
 0x691   : > { %v799_v56 = vadd.f32 %v1266_v54, %v795_v55 }
 0x692   : > { %v1338_v57 = vpop.f32.mrf.mxu0 }
 0x693   : > { %1496 = vtanh.f32 %v799_v56  ;;  %v800_v59 = vmul.f32 0.5, %v799_v56  ;;  %v1268_v56 = vld [vmem:[%s1896_s11 + $0x10] sm:$0xff] }
 0x695   : > { %1498 = vtanh.f32 %v800_v59 }
 0x6a0   : > { %v1497_v58 = vpop.eup %1496 }
 0x6a1   : > { %807 = vrot.lane.b32.xlu1 %v1497_v58, %s1705_s9 }
 0x6a2   : > { %v1499_v60 = vpop.eup %1498 }
 0x6a3   : > { %v802_v61 = vadd.f32 1.0, %v1499_v60 }
 0x6a5   : > { %v803_v62 = vmul.f32 0.5, %v802_v61 }
 0x6a7   : > { %v805_v1 = vmul.f32 %v803_v62, %v678_v49 }
 0x713   : > { %v808_v63 = vpop.permute.xlu1 %807 }
 0x714   : > { %v810_v0 = vmul.f32 %v808_v63, %v803_v62 }
 0x716   : > { %812 = vrot.lane.b32.xlu0 %v810_v0, %s1706_s10 }
 0x788   : > { %v813_v2 = vpop.permute.xlu0 %812 }
 0x789   : > { %v815_v3 = vadd.f32 %v813_v2, %v805_v1 }
 0x78b   : > { %1500 = vtanh.f32 %v815_v3 }
 0x798   : > { %v1501_v4 = vpop.eup %1500 }
 0x799   : > { %818 = vrot.lane.b32.xlu1 %v1501_v4, %s1705_s9 }
 0x80b   : > { %v819_v5 = vpop.permute.xlu1 %818 }
 0x80c   : > { %v1979_v6 = vmul.f32 %v819_v5, %v803_v62  ;;  %v437_v5 = vld [vmem:[#allocation5] sm:$0xff] }
 0x80e   : > { %862 = vrot.lane.b32.xlu0 %v1979_v6, %s1706_s10 }
 0x880   : > { %v863_v7 = vpop.permute.xlu0 %862 }
 0x881   : > { %1348 = vmatmul.mubr.msk.f32.vlgmr.msra.gmra.mxu1 %vm440_vm3, %v863_v7 }
 0x941   : > { %v932_v9 = vpop.f32.mrf.mxu1 }
 0x942   : > { %v936_v10 = vadd.f32 %v1269_v8, %v932_v9 }
 0x943   : > { %v1349_v11 = vpop.f32.mrf.mxu1 }
 0x944   : > { %1502 = vtanh.f32 %v936_v10  ;;  %v937_v14 = vmul.f32 0.5, %v936_v10 }
 0x946   : > { %1504 = vtanh.f32 %v937_v14 }
 0x951   : > { %v1503_v12 = vpop.eup %1502 }
 0x952   : > { %944 = vrot.lane.b32.xlu1 %v1503_v12, %s1705_s9 }
 0x953   : > { %v1505_v15 = vpop.eup %1504 }
 0x954   : > { %v939_v16 = vadd.f32 1.0, %v1505_v15 }
 0x956   : > { %546 = vrot.lane.b32.xlu1 %v1262_v13, %s1707_s2  ;;  %v940_v17 = vmul.f32 0.5, %v939_v16 }
 0x958   : > { %v942_v23 = vmul.f32 %v940_v17, %v815_v3 }
 0x9c4   : > { %v945_v18 = vpop.permute.xlu1 %944 }
 0x9c5   : > { %v947_v19 = vmul.f32 %v945_v18, %v940_v17 }
 0x9c7   : > { %949 = vrot.lane.b32.xlu0 %v947_v19, %s1706_s10 }
 0x9c8   : > { %v547_v20 = vpop.permute.xlu1 %546 }
 0x9c9   : > { %v549_v21 = vmul.f32 %v547_v20, %v1953_v34  ;;  %v822_v22 = vmul.f32 %v1979_v6, %v547_v20  ;;  %v685_v29 = vmul.f32 %v1970_v52, %v547_v20 }
 0x9cb   : > { %551 = vrot.lane.b32.xlu1 %v549_v21, %s1706_s10 }
 0x9cf   : > { %824 = vrot.lane.b32.xlu1 %v822_v22, %s1706_s10 }
 0xa39   : > { %v950_v24 = vpop.permute.xlu0 %949 }
 0xa3a   : > { %v1995_v25 = vadd.f32 %v950_v24, %v942_v23 }
 0xa3c   : > { %1506 = vtanh.f32 %v1995_v25 }
 0xa3d   : > { %v552_v26 = vpop.permute.xlu1 %551 }
 0xa3e   : > { %v554_v27 = vsel %vm440_vm3, %v552_v26, 0.0 }
 0xa3f   : > { %555 = vadd.xlane.f32.xlu1 %v554_v27 }
 0xa41   : > { %v825_v35 = vpop.permute.xlu1 %824 }
 0xa42   : > { %v827_v43 = vsel %vm440_vm3, %v825_v35, 0.0 }
 0xa49   : > { %v1507_v28 = vpop.eup %1506 }
 0xa4a   : > { %955 = vrot.lane.b32.xlu0 %v1507_v28, %s1705_s9 }
 0xa4e   : > { %687 = vrot.lane.b32.xlu0 %v685_v29, %s1706_s10 }
 0xabc   : > { %v956_v31 = vpop.permute.xlu0 %955 }
 0xabd   : > { %v2002_v32 = vmul.f32 %v956_v31, %v940_v17  ;;  %v1271_v17 = vld [vmem:[%s1896_s11 + $0x18] sm:$0xff] }
 0xabf   : > { %v959_v33 = vmul.f32 %v2002_v32, %v547_v20 }
 0xac0   : > { %v688_v38 = vpop.permute.xlu0 %687 }
 0xac1   : > { %961 = vrot.lane.b32.xlu0 %v959_v33, %s1706_s10  ;;  %v690_v41 = vsel %vm440_vm3, %v688_v38, 0.0 }
 0xac8   : > { %v556_v37 = vpop.xlane.xlu1 %555 }
 0xac9   : > { %v558_v39 = vadd.f32 %v557_v36, %v556_v37 }
 0xacb   : > { %v559_v42 = vmax.f32 %v436_v40, %v558_v39 }
 0xacd   : > { %v560_v44 = vsub.f32 %v436_v40, %v559_v42  ;;  %v563_v47 = vsub.f32 %v558_v39, %v559_v42  ;;  %v438_v39 = vld [vmem:[#allocation6] sm:$0xff] }
 0xacf   : > { %v561_v45 = vmul.f32 1.442695, %v560_v44  ;;  %v564_v49 = vmul.f32 1.442695, %v563_v47 }
 0xad1   : > { %1508 = vpow2.f32 %v561_v45 }
 0xad2   : > { %1510 = vpow2.f32 %v564_v49 }
 0xade   : > { %v1509_v46 = vpop.eup %1508 }
 0xadf   : > { %v1511_v51 = vpop.eup %1510  ;;  %v566_v7 = vmul.f32 %v1509_v46, %v437_v5 }
 0xae0   : > { %691 = vadd.xlane.f32.xlu0 %v690_v41 }
 0xae1   : > { %v567_v8 = vadd.f32 %v1511_v51, %v566_v7 }
 0xae4   : > { %828 = vadd.xlane.f32.xlu0 %v827_v43 }
 0xafa   : > { %570 = vperm.xlu0 %1482, %v1509_v46  }
 0xb33   : > { %v962_v48 = vpop.permute.xlu0 %961 }
 0xb34   : > { %v964_v50 = vsel %vm440_vm3, %v962_v48, 0.0 }
 0xb35   : > { %965 = vadd.xlane.f32.xlu1 %v964_v50 }
 0xb46   : > { %576 = vperm.xlu1 %1483, %v1511_v51  }
 0xb69   : > { %v692_v54 = vpop.xlane.xlu0 %691 }
 0xb6a   : > { %v695_v55 = vadd.f32 %v1265_v53, %v692_v54 }
 0xb6c   : > { %v696_v57 = vmax.f32 %v559_v42, %v695_v55 }
 0xb6d   : > { %v829_v58 = vpop.xlane.xlu0 %828 }
 0xb6e   : > { %v697_v59 = vsub.f32 %v559_v42, %v696_v57  ;;  %v700_v60 = vsub.f32 %v695_v55, %v696_v57  ;;  %v832_v61 = vadd.f32 %v1268_v56, %v829_v58 }
 0xb70   : > { %v698_v62 = vmul.f32 1.442695, %v697_v59  ;;  %v701_v63 = vmul.f32 1.442695, %v700_v60  ;;  %v833_v0 = vmax.f32 %v696_v57, %v832_v61 }
 0xb72   : > { %1512 = vpow2.f32 %v698_v62  ;;  %v834_v1 = vsub.f32 %v696_v57, %v833_v0  ;;  %v837_v2 = vsub.f32 %v832_v61, %v833_v0 }
 0xb73   : > { %1514 = vpow2.f32 %v701_v63 }
 0xb74   : > { %v835_v3 = vmul.f32 1.442695, %v834_v1  ;;  %v838_v4 = vmul.f32 1.442695, %v837_v2 }
 0xb75   : > { %v571_v40 = vpop.permute.xlu0 %570 }
 0xb76   : > { %1516 = vpow2.f32 %v835_v3  ;;  %v573_v41 = vmul.f32 %v571_v40, %v438_v39 }
 0xb77   : > { %1518 = vpow2.f32 %v838_v4 }
 0xb7f   : > { %v1513_v9 = vpop.eup %1512 }
 0xb80   : > { %v1515_v10 = vpop.eup %1514  ;;  %v703_v11 = vmul.f32 %v1513_v9, %v567_v8 }
 0xb81   : > { %713 = vperm.xlu1 %1483, %v1515_v10  }
 0xb82   : > { %v704_v12 = vadd.f32 %v1515_v10, %v703_v11 }
 0xb83   : > { %v1517_v13 = vpop.eup %1516 }
 0xb84   : > { %v1519_v14 = vpop.eup %1518  ;;  %v840_v15 = vmul.f32 %v1517_v13, %v704_v12 }
 0xb85   : > { %850 = vperm.xlu1 %1483, %v1519_v14  }
 0xb86   : > { %v841_v16 = vadd.f32 %v1519_v14, %v840_v15 }
 0xbbe   : > { %v966_v18 = vpop.xlane.xlu1 %965 }
 0xbbf   : > { %v969_v19 = vadd.f32 %v1271_v17, %v966_v18 }
 0xbc1   : > { %v970_v20 = vmax.f32 %v833_v0, %v969_v19 }
 0xbc2   : > { %v577_v29 = vpop.permute.xlu1 %576 }
 0xbc3   : > { %v971_v21 = vsub.f32 %v833_v0, %v970_v20  ;;  %v974_v22 = vsub.f32 %v969_v19, %v970_v20  ;;  %1007 = vst.msk [vmem:[#allocation4] sm:$0xff] %vm1006_vm4, %v970_v20  ;;  %v579_v31 = vmul.f32 %v577_v29, %v1953_v34 }
 0xbc5   : > { %v972_v23 = vmul.f32 1.442695, %v971_v21  ;;  %v975_v24 = vmul.f32 1.442695, %v974_v22 }
 0xbc7   : > { %1520 = vpow2.f32 %v972_v23 }
 0xbc8   : > { %1522 = vpow2.f32 %v975_v24 }
 0xbd4   : > { %v1521_v26 = vpop.eup %1520 }
 0xbd5   : > { %v1523_v27 = vpop.eup %1522  ;;  %v977_v28 = vmul.f32 %v1521_v26, %v841_v16 }
 0xbd6   : > { %987 = vperm.xlu1 %1483, %v1523_v27  }
 0xbd7   : > { %v978_v30 = vadd.f32 %v1523_v27, %v977_v28 }
 0xbd9   : > { %1008 = vst.msk [vmem:[#allocation5] sm:$0xff] %vm1006_vm4, %v978_v30 }
 0xbda   : > { %581 = vrot.lane.b32.xlu1 %v579_v31, %s1706_s10 }
 0xbde   : > { %707 = vperm.xlu1 %1483, %v1513_v9  }
 0xbfc   : > { %v714_v33 = vpop.permute.xlu1 %713 }
 0xbfd   : > { %v716_v35 = vmul.f32 %v714_v33, %v1970_v52 }
 0xbff   : > { %718 = vrot.lane.b32.xlu1 %v716_v35, %s1706_s10 }
 0xc00   : > { %v851_v36 = vpop.permute.xlu1 %850 }
 0xc01   : > { %v853_v37 = vmul.f32 %v851_v36, %v1979_v6 }
 0xc03   : > { %855 = vrot.lane.b32.xlu0 %v853_v37, %s1706_s10  ;;  %844 = vperm.xlu1 %1483, %v1517_v13  }
 0xc07   : > { %981 = vperm.xlu1 %1483, %v1521_v26  }
 0xc0b   : > { %997 = vrot.lane.b32.xlu1 %v2002_v32, %s1706_s10 }
 0xc51   : > { %v988_v34 = vpop.permute.xlu1 %987 }
 0xc52   : > { %v990_v38 = vmul.f32 %v988_v34, %v2002_v32 }
 0xc54   : > { %992 = vrot.lane.b32.xlu0 %v990_v38, %s1706_s10 }
 0xc55   : > { %v582_v52 = vpop.permute.xlu1 %581 }
 0xc56   : > { %v584_v42 = vadd.f32 %v582_v52, %v573_v41 }
 0xc58   : > { %1002 = vrot.lane.b32.xlu0 %v1995_v25, %s1707_s2 }
 0xc59   : > { %v708_v6 = vpop.permute.xlu1 %707 }
 0xc5a   : > { %v710_v43 = vmul.f32 %v708_v6, %v584_v42 }
 0xc71   : > { %v719_v44 = vpop.permute.xlu1 %718 }
 0xc72   : > { %v721_v45 = vadd.f32 %v719_v44, %v710_v43 }
 0xc75   : > { %v856_v48 = vpop.permute.xlu0 %855 }
 0xc7e   : > { %v845_v46 = vpop.permute.xlu1 %844 }
 0xc7f   : > { %v847_v47 = vmul.f32 %v845_v46, %v721_v45 }
 0xc81   : > { %v858_v49 = vadd.f32 %v856_v48, %v847_v47 }
 0xc82   : > { %v982_v50 = vpop.permute.xlu1 %981 }
 0xc83   : > { %v984_v32 = vmul.f32 %v982_v50, %v858_v49 }
 0xc86   : > { %v998_v51 = vpop.permute.xlu1 %997 }
 0xc87   : > { %1000 = vst.msk [vmem:[#allocation2] sm:$0xff] %vm440_vm3, %v998_v51 }
 0xcc6   : > { %v993_v53 = vpop.permute.xlu0 %992 }
 0xcc7   : > { %v995_v54 = vadd.f32 %v993_v53, %v984_v32  ;;  %1013 = sbr.rel (%p1272_p12) target bundleno = 3614 (0xe1e), region = 136 }
 0xcc9   : > { %1009 = vst.msk [vmem:[#allocation6] sm:$0xff] %vm440_vm3, %v995_v54 }
 0xcca   : > { %v1003_v55 = vpop.permute.xlu0 %1002 }
 0xccb   : > { %1005 = vst.msk [vmem:[#allocation3] sm:$0xff] %vm440_vm3, %v1003_v55 }
 0xccc   : > { %v1709_v25 = vmov 0   ;;  %v1710_v56 = vmov 0.0   ;;  %v1024_v57 = vld [vmem:[#allocation12 + $0x18] sm:$0xff]  ;;  %v1023_v58 = vld [vmem:[#allocation12 + $0x10] sm:$0xff]  ;;  %v1022_v59 = vld [vmem:[#allocation12 + $0x8] sm:$0xff]  ;;  %vm1711_vm5 = vmmov 0  }
 0xccd   : > { %1524 = vset.pattern.permute.xlu0 %v1709_v25  ;;  %1350 = vmatprep.subr.mxu0 %v1710_v56  ;;  %v1021_v60 = vld [vmem:[#allocation12] sm:$0xff]  ;;  %v1273_v0 = vld [vmem:[%s2096_s5] ss:$0 sm:$0xff] }
 0xcce   : > { %1016 = vperm.xlu0 %1524, %v978_v30   ;;  %1351 = vmatpush3.msra.mxu0 %v1024_v57 }
 0xccf   : > { %1352 = vmatprep.subr.mxu0 %v1710_v56  ;;  %1358 = vmatprep.mubr.msk.f32.mxu0 %vm1711_vm5, %v1710_v56 }
 0xcd0   : > { %1353 = vmatpush3.msra.mxu0 %v1023_v58 }
 0xcd1   : > { %1354 = vmatprep.subr.mxu0 %v1710_v56 }
 0xcd2   : > { %1355 = vmatpush3.msra.mxu0 %v1022_v59 }
 0xcd3   : > { %1356 = vmatprep.subr.mxu0 %v1710_v56 }
 0xcd4   : > { %1357 = vmatpush3.msra.mxu0 %v1021_v60 }
 0xd49   : > { %v1017_v61 = vpop.permute.xlu0 %1016 }
 0xd4a   : > { %1525 = vrcp.f32 %v1017_v61 }
 0xd57   : > { %v1526_v62 = vpop.eup %1525 }
 0xd58   : > { %v1020_v63 = vmul.f32 %v1526_v62, %v995_v54 }
 0xd5a   : > { %1359 = vmatmul.mubr.msk.f32.vlgmr.msra.gmra.mxu0 %vm440_vm3, %v1020_v63 }
 0xe1a   : > { %v1101_v1 = vpop.f32.mrf.mxu0 }
 0xe1b   : > { %v1102_v2 = vadd.f32 %v1273_v0, %v1101_v1 }
 0xe1c   : > { %v1360_v3 = vpop.f32.mrf.mxu0 }
 0xe1d   : > { %1105 = vst [vmem:[%s415_s23] sm:$0xff] %v1102_v2 }
 0xe1e PF: > { %s1276_s17 = sshll.u32 %s1683_s27, 7  ;;  %s1120_s13 = sshll.u32 %s415_s23, 4  ;;  %s1121_s13 = int_to_ptr.vmem [resolvable:$true] %s1120_s13 }
 0xe1f   : > { %s1118_s21 = scalar_lea.hbm %s2097_s6, %s1276_s17  ;;  %s1107_s16 = scalar_lea.sflag [#allocation11], %s413_s8 }
 0xe20   : > { %s1579_s7 = scalar_lea.vmem %s1121_s13, 128  ;;  %p2122_p2 = scmp.ne.s32.totalorder %s2112_s15, 0 }
 0xe21   : > { %p1580_p1 = scmp.ne.s32.totalorder %s1121_s13, %s1579_s7  ;;  %s1712_s11 = smov [#allocation14]  }
 0xe22   : > { %s1583_s9 = sshll.u32 %s1712_s11, 4  ;;  %s1584_s9 = int_to_ptr.vmem [resolvable:$false] %s1583_s9 }
 0xe23   : > { %p1581_p5 = pnand %p1580_p1, %p2122_p2  ;;  %s1585_s10 = scalar_lea.vmem %s1584_s9, 256 }
 0xe24   : > { %p1586_p0 = scmp.lt.s32.totalorder %s1121_s13, %s1584_s9  ;;  %p1587_p4 = scmp.lt.s32.totalorder %s1585_s10, %s1579_s7 }
 0xe25   : > { %p1582_p6 = pneg %p1581_p5 }
 0xe26   : > { %p1588_p8 = por %p1587_p4, %p1586_p0 }
 0xe28   : > { %p1589_p9 = pnand %p1588_p8, %p1582_p6 }
 0xe2a   : > { %1592 = shalt.err (!%p1589_p9)
}
 0xe2b   : > { %s1593_s27 = scalar_lea.hbm %s1118_s21, 128  ;;  %s1597_s23 = scalar_lea.hbm %s2097_s6, 256 }
 0xe2c   : > { %p1594_p11 = scmp.ne.s32.totalorder %s1118_s21, %s1593_s27  ;;  %p1598_p3 = scmp.lt.s32.totalorder %s1118_s21, %s2097_s6 }
 0xe2d   : > { %p1599_p7 = scmp.lt.s32.totalorder %s1597_s23, %s1593_s27 }
 0xe2e   : > { %p1595_p10 = pnand %p1594_p11, %p2122_p2 }
 0xe2f   : > { %p1600_p12 = por %p1599_p7, %p1598_p3 }
 0xe30   : > { %p1596_p13 = pneg %p1595_p10 }
 0xe32   : > { %p1601_p1 = pnand %p1600_p12, %p1596_p13 }
 0xe34   : > { %1604 = shalt.err (!%p1601_p1)
}
 0xe35   : > { %1369 = dma.vmem_to_hbm [thread:$0]  (%p2122_p2), %s1121_s13, 128, %s1118_s21, %s1107_s16  }
 0xe36 PF: > { %s2123_s2 = sld [smem:[#allocation18_spill]]  ;;  %p1386_p5 = scmp.ge.s32.totalorder %s1695_s30, 2 }
 0xe37   : > { %s2124_s26 = sld [smem:[#allocation22_spill]] }
 0xe3c   : > { %s1132_s12 = sand.u32 1, %s2123_s2  }
 0xe3d   : > { %p2125_p6 = scmp.ne.s32.totalorder %s2124_s26, 0  ;;  %s1133_s17 = scalar_lea.sflag [#allocation11], %s1132_s12 }
 0xe3f   : > { %p1379_p0 = pnand %p1386_p5, %p2125_p6 }
 0xe41   : > { %p1380_p4 = pneg %p1379_p0 }
 0xe43   : > { %1654 = dma.done.wait (%p1380_p4), %s1133_s17, 128  }
 0xe44   : > { %1656 = vsyncadd (%p1380_p4), %s1133_s17, 4294967168  ;;  %s21_s30 = sadd.s32 1, %s1695_s30   ;;  %s2126_s20 = sld [smem:[#allocation19_spill]] }
 0xe45   : > { %p18_p8 = scmp.ge.s32.totalorder %s21_s30, 8   ;;  %s2127_s23 = sld [smem:[#allocation23_spill]] }
 0xe46   : > { %s2128_s15 = sld [smem:[#allocation24_spill]]  ;;  %s2131_s21 = smov %s1663_s22 }
 0xe47   : > { %s2129_s19 = sld [smem:[#allocation20_spill]]  ;;  %s2133_s24 = smov %s1675_s25 }
 0xe48   : > { %s2130_s13 = sld [smem:[#allocation21_spill]]  ;;  %s2135_s26 = smov %s1687_s28 }
 0xe49   : > { %s2136_s27 = smov %s1691_s29 }
 0xe4a   : > { %s2132_s22 = smov %s2126_s20  ;;  %20 = sbr.rel (!%p18_p8) target bundleno = 10 (0xa), region = 191 }
 0xe4c   : > { %s2134_s25 = smov %s2128_s15 }
 0xe4d   : > { %s2137_s28 = smov %s2129_s19 }
 0xe4e   : > { %s2138_s29 = smov %s2130_s13 }
 0xe4f   :  { %1138 = vsyncpa [#allocation10], 1 }
 0xe50   :  { %1140 = vsyncpa [#allocation10 + $0x1], 1 }
 0xe51   :  { %1141 = vsyncpa [#allocation13], 1 }
 0xe52   :  { %1142 = vsyncpa [#allocation11], 1 }
 0xe53   :  { %1144 = vsyncpa [#allocation11 + $0x1], 1 }

</bundles_post_ra>
